<compile_context>
chip_gen: v7x
topology: tpu7x:2x2x1
jax: 0.10.0
libtpu: 0.0.40
codegen_flags: <defaults>
</compile_context>

<pallas_src>
import numpy as np
import jax
import jax.numpy as jnp
from jax.experimental import pallas as pl
from jax.experimental.pallas import tpu as pltpu

DENSE_PREFIX_DIMS = 2  # (batch, channels), matching the PyTorch code


# ----------------------------------------------------------------------------
# VMEM / tiling helpers (padding-, dtype- and generation-aware)
# ----------------------------------------------------------------------------
def _round_up(x, m):
    return -(-int(x) // int(m)) * int(m)


def _sublane_mult(dtype):
    # second-minor VMEM tiling: 8 rows for 4-byte, 16 for 2-byte, 32 for 1-byte
    return max(8, 32 // jnp.dtype(dtype).itemsize)


def _padded_vmem_bytes(block_shape, dtype):
    """Real VMEM footprint of a block: last dim padded to 128 lanes,
    second-minor padded to the dtype sublane multiple."""
    dt = jnp.dtype(dtype)
    dims = [int(d) for d in block_shape]
    if len(dims) == 1:
        dims = [1] + dims
    lead = 1
    for d in dims[:-2]:
        lead *= d
    return (lead * _round_up(dims[-2], _sublane_mult(dt))
            * _round_up(dims[-1], 128) * dt.itemsize)


def _vmem_capacity_bytes():
    try:
        info = pltpu.get_tpu_info()
        cap = int(getattr(info, "vmem_capacity_bytes", 0) or 0)
        if cap > 0:
            return cap
    except Exception:
        pass
    return 64 << 20  # conservative default (v7x per-TensorCore VMEM)


def _vmem_budgets():
    cap = _vmem_capacity_bytes()
    # double-buffered in+out blocks (+ one f32 temp) must fit the budget
    ws_budget = min((2 * cap) // 5, 28 << 20)
    vmem_limit = min((3 * cap) // 4, 96 << 20)
    return ws_budget, vmem_limit


def _block_ws_bytes(tile, in_row_shape, out_row_shape, in_dtype, out_dtype):
    """Padded working set of one grid step: double-buffered in+out blocks plus
    one f32 temp for the in-kernel accumulation cast."""
    b_in = _padded_vmem_bytes((tile,) + tuple(in_row_shape), in_dtype)
    b_out = _padded_vmem_bytes((tile,) + tuple(out_row_shape), out_dtype)
    b_tmp = _padded_vmem_bytes((tile,) + tuple(in_row_shape), jnp.float32)
    return 2 * (b_in + b_out) + b_tmp


def _choose_tile_m(M, in_row_shape, out_row_shape, in_dtype, out_dtype,
                   ws_budget, *, want_two_steps=True):
    """Leading-axis tile: padding-aware, dtype-aware, and preferring >=2 grid
    steps so the 'parallel' axis can be sharded across v7x's 2 TensorCores."""
    M = int(M)
    sub = _sublane_mult(in_dtype)

    def ws(t):
        return _block_ws_bytes(t, in_row_shape, out_row_shape, in_dtype,
                               out_dtype)

    if M <= sub:
        return M
    if ws(M) <= ws_budget:
        tile = M
    else:
        per = max(ws(sub), 1)
        tile = sub * max(1, int(ws_budget // per))
        tile = min(tile, (M // sub) * sub)
        tile = max(tile, sub)
        while tile > sub and ws(tile) > ws_budget:
            tile -= sub
    if want_two_steps and tile >= M and M >= 2 * sub:
        half = _round_up(-(-M // 2), sub)
        if half < M:
            tile = half
    return tile


# ----------------------------------------------------------------------------
# Selection matrix: fused sum + repeated diagonal as one linear map
# ----------------------------------------------------------------------------
def _selection_matrix(ent_shape, kept_axes):
    """S[p, i] = 1 iff every kept-axis coordinate of flat entity index p is i.
    X_flat @ S == torch.sum(X, pooled_dims) followed by repeated
    torch.diagonal(0, -1, -2) over the kept axes."""
    ent_shape = tuple(int(s) for s in ent_shape)
    kept_axes = tuple(int(a) for a in kept_axes)
    n_e = ent_shape[kept_axes[0]]
    e_flat = int(np.prod(ent_shape))
    coords = np.indices(ent_shape).reshape(len(ent_shape), e_flat)
    kept = coords[list(kept_axes), :]
    same = np.all(kept == kept[:1, :], axis=0)
    S = np.zeros((e_flat, n_e), dtype=np.float32)
    rows = np.nonzero(same)[0]
    S[rows, kept[0, rows]] = 1.0
    return S


# ----------------------------------------------------------------------------
# Pallas kernels
# ----------------------------------------------------------------------------
def _make_native_pool_kernel(pool_axes_blk):
    """Fused sum over pooled axes + repeated last-two-dims diagonal.
    VPU/XLU only (MXU idle) — used when the block is already lane-dense."""
    pool_axes_blk = tuple(int(a) for a in pool_axes_blk)

    def kernel(x_ref, o_ref):
        x = x_ref[...].astype(jnp.float32)              # f32 accumulation
        if pool_axes_blk:
            x = jnp.sum(x, axis=pool_axes_blk)
        while x.ndim > 2:                               # repeated diagonal
            n = x.shape[-1]
            row = jax.lax.broadcasted_iota(jnp.int32, (n, n), 0)
            col = jax.lax.broadcasted_iota(jnp.int32, (n, n), 1)
            x = jnp.sum(jnp.where(row == col, x, 0.0), axis=-1)
        o_ref[...] = x.astype(o_ref.dtype)

    return kernel


def _diag_block_kernel(x_ref, o_ref):
    """Diagonal of the last two dims; only on-diagonal blocks are DMA'd."""
    x = x_ref[...].astype(jnp.float32)
    n = x.shape[-1]
    row = jax.lax.broadcasted_iota(jnp.int32, (n, n), 0)
    col = jax.lax.broadcasted_iota(jnp.int32, (n, n), 1)
    o_ref[...] = jnp.sum(jnp.where(row == col, x, 0.0), axis=-1).astype(o_ref.dtype)


def _make_segmat_kernel(s_dtype):
    """Fused sum+diag as one contraction with a constant 0/1 matrix.  MXU time
    is <= 2*128/itemsize flop per HBM byte, well under the ridge on all three
    generations, so it hides under the DMA that bounds this kernel."""
    s_dtype = jnp.dtype(s_dtype)

    def kernel(x_ref, s_ref, o_ref):
        x = x_ref[...].astype(s_dtype)
        # Products are exact (S is 0/1) and accumulation is f32, so accuracy is
        # independent of the MXU's f32 pass mode.
        o_ref[...] = jnp.dot(x, s_ref[...],
                             preferred_element_type=jnp.float32).astype(o_ref.dtype)

    return kernel


# ----------------------------------------------------------------------------
# Wrappers
# ----------------------------------------------------------------------------
def _entity_pool_xla(x, kept_ent_axes):
    """Plain-XLA fallback (small tensors are launch-overhead bound)."""
    ent_ndim = x.ndim - DENSE_PREFIX_DIMS
    kept = set(int(a) for a in kept_ent_axes)
    pooled = tuple(DENSE_PREFIX_DIMS + a for a in range(ent_ndim)
                   if a not in kept)
    y = jnp.sum(x, axis=pooled) if pooled else x
    while y.ndim > DENSE_PREFIX_DIMS + 1:
        y = jnp.diagonal(y, 0, -1, -2)
    return y


def _entity_pool_native(x, ent_shape, kept, pooled, n_e, M):
    """Trailing entity dim >= 128: lane-dense blocks, reductions on VPU/XLU."""
    B, C = int(x.shape[0]), int(x.shape[1])
    x3 = x.reshape((M,) + ent_shape)                    # free reshape
    pool_axes_blk = tuple(a + 1 for a in pooled)
    n_ent = len(ent_shape)

    ws_budget, vmem_limit = _vmem_budgets()
    tile_m = _choose_tile_m(M, ent_shape, (n_e,), x.dtype, x.dtype, ws_budget)
    if _block_ws_bytes(tile_m, ent_shape, (n_e,), x.dtype, x.dtype) > ws_budget:
        # TODO(synk): for pooled extents too large for one block, add a
        # trailing "arbitrary" reduction grid axis with an f32 VMEM accumulator
        # instead of falling back to XLA.
        return _entity_pool_xla(x, kept)

    grid = (pl.cdiv(M, tile_m),)
    bytes_accessed = (x.size + M * n_e) * x.dtype.itemsize

    out = pl.pallas_call(
        _make_native_pool_kernel(pool_axes_blk),
        out_shape=jax.ShapeDtypeStruct((M, n_e), x.dtype),
        grid=grid,
        in_specs=[pl.BlockSpec((tile_m,) + ent_shape,
                               lambda i: (i,) + (0,) * n_ent)],
        out_specs=pl.BlockSpec((tile_m, n_e), lambda i: (i, 0)),
        compiler_params=pltpu.CompilerParams(
            dimension_semantics=("parallel",),
            vmem_limit_bytes=int(vmem_limit)),
        cost_estimate=pl.CostEstimate(
            flops=int(2 * x.size), transcendentals=0,
            bytes_accessed=int(bytes_accessed)),
    )(x3)
    return out.reshape(B, C, n_e)


def _entity_pool_native_diag(x, n, M):
    """Pure diagonal of an [.., n, n] relation with n >= 128: only the
    (tile_m, 128, 128) blocks ON the diagonal are moved HBM->VMEM."""
    B, C = int(x.shape[0]), int(x.shape[1])
    x3 = x.reshape(M, n, n)                             # free reshape
    tile_n = 128

    ws_budget, vmem_limit = _vmem_budgets()
    tile_m = _choose_tile_m(M, (tile_n, tile_n), (tile_n,), x.dtype, x.dtype,
                            ws_budget)
    grid = (pl.cdiv(M, tile_m), pl.cdiv(n, tile_n))
    bytes_accessed = (M * n * tile_n + M * n) * x.dtype.itemsize

    out = pl.pallas_call(
        _diag_block_kernel,
        out_shape=jax.ShapeDtypeStruct((M, n), x.dtype),
        grid=grid,
        # TODO(synk): if xprof shows exposed DMA for n >> 128 (strided row
        # segments of the diagonal blocks), add pipeline_mode=pl.Buffered(3).
        in_specs=[pl.BlockSpec((tile_m, tile_n, tile_n),
                               lambda i, j: (i, j, j))],
        out_specs=pl.BlockSpec((tile_m, tile_n), lambda i, j: (i, j)),
        compiler_params=pltpu.CompilerParams(
            dimension_semantics=("parallel", "parallel"),
            vmem_limit_bytes=int(vmem_limit)),
        cost_estimate=pl.CostEstimate(
            flops=int(M * n * tile_n), transcendentals=0,
            bytes_accessed=int(bytes_accessed)),
    )(x3)
    return out.reshape(B, C, n)


def _entity_pool_segmat(x, ent_shape, kept, n_e, M):
    """Trailing entity dim < 128: flatten entity dims into a dense lane axis
    and apply the fused sum+diag as one 0/1-matrix contraction; fold rows into
    lanes (kron(I_k, S)) when free so the output slab is 128-lane dense too."""
    B, C = int(x.shape[0]), int(x.shape[1])
    e_flat = int(np.prod(ent_shape))
    S = _selection_matrix(ent_shape, kept)              # (e_flat, n_e) 0/1

    k = 1
    if n_e < 128 and 128 % n_e == 0 and M % (128 // n_e) == 0:
        k = 128 // n_e
        S = np.kron(np.eye(k, dtype=np.float32), S)     # (k*e_flat, k*n_e)
    m_eff = M // k
    lanes_in = k * e_flat
    lanes_out = k * n_e

    if x.dtype in (jnp.dtype(jnp.float32), jnp.dtype(jnp.bfloat16)):
        s_dtype = x.dtype
    else:
        s_dtype = jnp.dtype(jnp.float32)
    s_dev = jnp.asarray(S, dtype=s_dtype)

    ws_budget, vmem_limit = _vmem_budgets()
    s_padded = _padded_vmem_bytes(s_dev.shape, s_dtype)
    if 2 * s_padded > ws_budget // 2:
        # TODO(synk): for huge pooled extents split E_flat over an "arbitrary"
        # reduction grid axis with an f32 VMEM accumulator instead of bailing.
        return _entity_pool_xla(x, kept)
    ws_budget -= 2 * s_padded

    tile_m = _choose_tile_m(m_eff, (lanes_in,), (lanes_out,), x.dtype, x.dtype,
                            ws_budget)
    if _block_ws_bytes(tile_m, (lanes_in,), (lanes_out,), x.dtype,
                       x.dtype) > ws_budget:
        return _entity_pool_xla(x, kept)

    x2 = x.reshape(m_eff, lanes_in)                     # free reshape
    grid = (pl.cdiv(m_eff, tile_m),)
    bytes_accessed = (x.size * x.dtype.itemsize
                      + s_dev.size * s_dev.dtype.itemsize
                      + M * n_e * x.dtype.itemsize)

    out = pl.pallas_call(
        _make_segmat_kernel(s_dtype),
        out_shape=jax.ShapeDtypeStruct((m_eff, lanes_out), x.dtype),
        grid=grid,
        in_specs=[pl.BlockSpec((tile_m, lanes_in), lambda i: (i, 0)),
                  pl.BlockSpec((lanes_in, lanes_out), lambda i: (0, 0))],
        out_specs=pl.BlockSpec((tile_m, lanes_out), lambda i: (i, 0)),
        compiler_params=pltpu.CompilerParams(
            dimension_semantics=("parallel",),
            vmem_limit_bytes=int(vmem_limit)),
        cost_estimate=pl.CostEstimate(
            flops=int(2 * m_eff * lanes_in * lanes_out), transcendentals=0,
            bytes_accessed=int(bytes_accessed)),
    )(x2, s_dev)
    return out.reshape(B, C, n_e)


def entity_pool(x, kept_ent_axes, *, min_pallas_bytes=1 << 20):
    """Fused `torch.sum(X, pooled_dims)` + repeated `X.diagonal(0, -1, -2)`.

    x:             [B, C, n_0, n_1, ...]   (one trailing axis per relation slot)
    kept_ent_axes: entity-axis positions (0-based within the trailing axes)
                   that belong to the target entity; the rest are summed out.
    returns        [B, C, n_entity]
    """
    kept = tuple(sorted(int(a) for a in set(kept_ent_axes)))
    ent_shape = tuple(int(s) for s in x.shape[DENSE_PREFIX_DIMS:])
    ent_ndim = len(ent_shape)
    assert kept and all(0 <= a < ent_ndim for a in kept)
    n_e = ent_shape[kept[0]]
    assert all(ent_shape[a] == n_e for a in kept), "diagonal needs equal extents"
    pooled = tuple(a for a in range(ent_ndim) if a not in kept)

    if not pooled and len(kept) == 1:                   # nothing to do
        return x

    # Launch-overhead-bound sizes: let XLA fuse the op instead.
    if x.size * x.dtype.itemsize < min_pallas_bytes:
        return _entity_pool_xla(x, kept)

    M = int(x.shape[0]) * int(x.shape[1])

    if ent_shape[-1] >= 128:
        if not pooled and len(kept) == 2:
            return _entity_pool_native_diag(x, n_e, M)
        return _entity_pool_native(x, ent_shape, kept, pooled, n_e, M)
    return _entity_pool_segmat(x, ent_shape, kept, n_e, M)


# ----------------------------------------------------------------------------
# Minimal schema machinery (stand-in for DataSchema / Relation / Entity / Data)
# ----------------------------------------------------------------------------
class Entity:
    def __init__(self, eid, n_instances):
        self.id = eid
        self.n_instances = n_instances


class Relation:
    def __init__(self, rid, entities):
        self.id = rid
        self.entities = entities


class DataSchema:
    def __init__(self, entities, relations):
        self.entities = entities
        self.relations = relations  # dict: rel_id -> Relation


def get_pooling_dims(entity, relation):
    dims = []
    for entity_dim, rel_entity in enumerate(relation.entities):
        if entity.id != rel_entity.id:
            dims.append(DENSE_PREFIX_DIMS + entity_dim)
    return dims


def entity_pooling_forward(schema, data, *, min_pallas_bytes=1 << 20):
    """data: dict rel_id -> array [B, C, n_i, n_j, ...] (one axis per slot)."""
    out = {}
    for entity in schema.entities:
        # The PyTorch loop overwrites entity_out, so only the LAST relation
        # containing the entity determines its output; skip the dead work.
        last_rel = None
        for relation in schema.relations.values():
            if any(e.id == entity.id for e in relation.entities):
                last_rel = relation
        if last_rel is None:
            out[entity.id] = None
            continue
        kept = [d for d, e in enumerate(last_rel.entities) if e.id == entity.id]
        out[entity.id] = entity_pool(data[last_rel.id], kept,
                                     min_pallas_bytes=min_pallas_bytes)
    return out


def ref_forward(schema, data):
    """Pure-JAX mirror of the PyTorch forward (loops over every relation)."""
    out = {}
    for entity in schema.entities:
        entity_out = None
        for relation in schema.relations.values():
            if entity.id not in [e.id for e in relation.entities]:
                continue
            pooling_dims = get_pooling_dims(entity, relation)
            X = data[relation.id]
            if pooling_dims:
                X = jnp.sum(X, axis=tuple(pooling_dims))
            while X.ndim > DENSE_PREFIX_DIMS + 1:
                X = jnp.diagonal(X, 0, -1, -2)
            entity_out = X
        out[entity.id] = entity_out
    return out


# ----------------------------------------------------------------------------
if __name__ == "__main__":
    B, C = 2, 4
    key = jax.random.PRNGKey(0)

    def rand(k, shape):
        # Values exactly representable in bf16 so the correctness check is
        # independent of the MXU's f32 pass mode (products with the 0/1
        # selection matrix are then exact; accumulation is f32 either way).
        v = jax.random.normal(k, shape, dtype=jnp.float32)
        return v.astype(jnp.bfloat16).astype(jnp.float32)

    # --- unit tests of the fused op over the structural cases ----------------
    cases = [
        ((16, 8), (0,)),       # segmat: sum over trailing dim, row-fold k=8
        ((16, 8), (1,)),       # segmat: sum over leading dim, no fold
        ((8, 8), (0, 1)),      # segmat: pure diagonal
        ((4, 16, 8), (1,)),    # segmat: two pooled dims, row-fold
        ((8, 128), (0,)),      # native: pool the lane-dense trailing dim
        ((8, 128), (1,)),      # native: keep the trailing dim (dense output)
        ((128, 128), (0, 1)),  # native: pure diagonal (diag-block DMA)
    ]
    for idx, (ent_shape, kept) in enumerate(cases):
        key, sub = jax.random.split(key)
        x = rand(sub, (B, C) + ent_shape)
        got = jax.block_until_ready(entity_pool(x, kept, min_pallas_bytes=0))
        want = _entity_pool_xla(x, kept)
        np.testing.assert_allclose(
            np.asarray(got), np.asarray(want), rtol=1e-5, atol=1e-5,
            err_msg=f"case {idx}: ent_shape={ent_shape} kept={kept}")

    # --- EntityPooling forward on a synthetic schema --------------------------
    e0, e1, e2 = Entity(0, 16), Entity(1, 8), Entity(2, 128)
    schema = DataSchema(
        [e0, e1, e2],
        {0: Relation(0, [e0, e1]),    # -> e0 output: sum pooling (segmat path)
         1: Relation(1, [e1, e2]),
         2: Relation(2, [e2, e2]),    # -> e2 output: diagonal (native path)
         3: Relation(3, [e1, e1])})   # -> e1 output: diagonal (segmat path)

    data = {}
    for rid, rel in schema.relations.items():
        key, sub = jax.random.split(key)
        data[rid] = rand(sub, (B, C) + tuple(e.n_instances for e in rel.entities))

    ref = ref_forward(schema, data)

    # Pallas forced (min_pallas_bytes=0) and the default small-tensor XLA
    # fallback must both match the PyTorch-equivalent reference.
    for threshold in (0, 1 << 20):
        out = entity_pooling_forward(schema, data, min_pallas_bytes=threshold)
        for v in out.values():
            jax.block_until_ready(v)
        for ent in schema.entities:
            assert out[ent.id].shape == (B, C, ent.n_instances), out[ent.id].shape
            np.testing.assert_allclose(
                np.asarray(out[ent.id]), np.asarray(ref[ent.id]),
                rtol=1e-5, atol=1e-5,
                err_msg=f"entity {ent.id} threshold={threshold}")

    print("KERNEL_OK")
</pallas_src>

<mosaic_0001>
module attributes {stable_mosaic.version = 11 : i64} {
  func.func @kernel(%arg0: i32, %arg1: memref<1x1024xf32, #tpu.memory_space<vmem>>, %arg2: memref<1024x128xf32, #tpu.memory_space<vmem>>, %arg3: memref<1x128xf32, #tpu.memory_space<vmem>>) attributes {dimension_semantics = [#tpu.dimension_semantics<parallel>], iteration_bounds = array<i64: 1>, scalar_prefetch = 0 : i64, scratch_operands = 0 : i64, tpu.core_type = #tpu.core_type<tc>, window_params = [{transform_indices = @transform_0, window_bounds = array<i64: 1, 1024>}, {pipeline_mode = #tpu.pipeline_mode<synchronous>, transform_indices = @transform_1, window_bounds = array<i64: 1024, 128>}, {transform_indices = @transform_2, window_bounds = array<i64: 1, 128>}]} {
    %c0 = arith.constant 0 : index
    %c0_0 = arith.constant 0 : index
    %0 = vector.load %arg1[%c0, %c0_0] : memref<1x1024xf32, #tpu.memory_space<vmem>>, vector<1x1024xf32>
    %c0_1 = arith.constant 0 : index
    %c0_2 = arith.constant 0 : index
    %1 = vector.load %arg2[%c0_1, %c0_2] : memref<1024x128xf32, #tpu.memory_space<vmem>>, vector<1024x128xf32>
    %cst = arith.constant dense<0.000000e+00> : vector<1x128xf32>
    %2 = tpu.matmul %0, %1, %cst {dimension_numbers = #tpu.dot_dimension_numbers<[1], [0], [0], [1], [0, 0, 1, 1], [], []>} : vector<1x1024xf32>, vector<1024x128xf32>, vector<1x128xf32> -> vector<1x128xf32>
    %c0_3 = arith.constant 0 : index
    %c0_4 = arith.constant 0 : index
    %3 = vector.load %arg3[%c0_3, %c0_4] : memref<1x128xf32, #tpu.memory_space<vmem>>, vector<1x128xf32>
    tpu.vector_store %arg3[%c0_3, %c0_4], %2 {strides = array<i32>} : memref<1x128xf32, #tpu.memory_space<vmem>>, vector<1x128xf32>,
    return
  }
  func.func @transform_0(%arg0: i32) -> (i32, i32) {
    %c0_i32 = arith.constant 0 : i32
    %c0_i32_0 = arith.constant 0 : i32
    return %arg0, %c0_i32 : i32, i32
  }
  func.func @transform_1(%arg0: i32) -> (i32, i32) {
    %c0_i32 = arith.constant 0 : i32
    %c0_i32_0 = arith.constant 0 : i32
    %c0_i32_1 = arith.constant 0 : i32
    return %c0_i32, %c0_i32_0 : i32, i32
  }
  func.func @transform_2(%arg0: i32) -> (i32, i32) {
    %c0_i32 = arith.constant 0 : i32
    %c0_i32_0 = arith.constant 0 : i32
    return %arg0, %c0_i32 : i32, i32
  }
}

</mosaic_0001>

<bundles_post_ra>
// kernel: tpu_custom_call.1
= control target key start
LH: loop header
LB: loop body
LE: loop exit
PB: predicated region body
PF: predicated region fallthrough
CT: control target
= control target key end

     0   :  { %7 = vsyncpa [#allocation3], 0  ;;  %s933_s0 = inlined_call_operand.hbm [shape: f32[1,1024], index: 0, kind: input, shape index: {}]   ;;  %s934_s1 = inlined_call_operand.hbm [shape: f32[1024,128], index: 1, kind: input, shape index: {}]   ;;  %s935_s2 = inlined_call_operand.hbm [shape: f32[1,128], index: 2, kind: output, shape index: {}]  }
   0x1   :  { %8 = vsyncpa [#allocation6], 0 }
   0x2   :  { %9 = vsyncpa [#allocation4], 0  ;;  %s850_s9 = smov [#allocation2]   ;;  %s851_s11 = smov [#allocation5]  }
   0x3   :  { %s16_s10 = sshll.u32 %s850_s9, 4  ;;  %s25_s12 = sshll.u32 %s851_s11, 4  ;;  %s17_s10 = int_to_ptr.vmem [resolvable:$true] %s16_s10  ;;  %s870_s12 = int_to_ptr.vmem [resolvable:$true] %s25_s12 }
   0x4   :  { %s778_s15 = scalar_lea.hbm %s933_s0, 128 }
   0x5   :  { %p779_p0 = scmp.ne.s32.totalorder %s933_s0, %s778_s15  ;;  %p782_p1 = scmp.lt.u32.totalorder %s778_s15, %s933_s0 }
   0x7   :  { %p784_p2 = pnand %p782_p1, %p779_p0 }
   0x9   :  { %787 = shalt.err (!%p784_p2)
}
   0xa   :  { %s788_s20 = scalar_lea.vmem %s17_s10, 128  ;;  %p793_p4 = scmp.lt.s32.totalorder %s17_s10, %s17_s10 }
   0xb   :  { %p789_p3 = scmp.ne.s32.totalorder %s17_s10, %s788_s20  ;;  %p794_p5 = scmp.lt.s32.totalorder %s788_s20, %s788_s20 }
   0xd   :  { %p795_p6 = por %p794_p5, %p793_p4 }
   0xf   :  { %p796_p7 = pnand %p795_p6, %p789_p3 }
  0x11   :  { %799 = shalt.err (!%p796_p7)
}
  0x12   :  { %19 = dma.hbm_to_vmem [thread:$0]  %s933_s0, 128, %s17_s10, [#allocation3]  }
  0x13   :  { %s800_s25 = scalar_lea.hbm %s934_s1, 16384 }
  0x14   :  { %p801_p8 = scmp.ne.s32.totalorder %s934_s1, %s800_s25  ;;  %p804_p9 = scmp.lt.u32.totalorder %s800_s25, %s934_s1 }
  0x16   :  { %p806_p10 = pnand %p804_p9, %p801_p8 }
  0x18   :  { %809 = shalt.err (!%p806_p10)
}
  0x19   :  { %s810_s30 = scalar_lea.vmem %s870_s12, 16384  ;;  %p815_p12 = scmp.lt.s32.totalorder %s870_s12, %s870_s12 }
  0x1a   :  { %p811_p11 = scmp.ne.s32.totalorder %s870_s12, %s810_s30  ;;  %p816_p13 = scmp.lt.s32.totalorder %s810_s30, %s810_s30 }
  0x1c   :  { %p817_p0 = por %p816_p13, %p815_p12 }
  0x1e   :  { %p818_p1 = pnand %p817_p0, %p811_p11 }
  0x20   :  { %821 = shalt.err (!%p818_p1)
}
  0x21   :  { %s852_s0 = smov 128   ;;  %s853_s3 = smov 8  }
  0x22   :  { %31 = dma.hbm_to_vmem [thread:$0]  %s934_s1, 16384, %s870_s12, [#allocation6], %s852_s0, %s852_s0, %s853_s3  }
  0x23   :  { %844 = dma.done.wait [#allocation3], 128  }
  0x24   :  { %845 = vsyncadd [#allocation3], 4294967168 }
  0x25   :  { %846 = dma.done.wait [#allocation6], 16384  }
  0x26   :  { %847 = vsyncadd [#allocation6], 4294950912  ;;  %v55_v0 = vld [vmem:[#allocation5 + $0x80] sm:$0xff]  ;;  %v56_v1 = vld [vmem:[#allocation5 + $0x88] sm:$0xff]  ;;  %v168_v47 = vlaneseq  ;;  %s854_s1 = smov [#allocation7]  }
  0x27   :  { %v87_v2 = vld [vmem:[#allocation5 + $0x180] sm:$0xff]  ;;  %v645_v3 = vpack.c.bf16 %v56_v1, %v55_v0  ;;  %v88_v4 = vld [vmem:[#allocation5 + $0x188] sm:$0xff]  ;;  %v57_v11 = vld [vmem:[#allocation5 + $0x90] sm:$0xff]  ;;  %s495_s6 = sshll.u32 %s854_s1, 4  ;;  %s496_s6 = int_to_ptr.vmem [resolvable:$true] %s495_s6 }
  0x28   :  { %v39_v5 = vld [vmem:[#allocation5] sm:$0xff]  ;;  %v40_v6 = vld [vmem:[#allocation5 + $0x8] sm:$0xff]  ;;  %v677_v7 = vpack.c.bf16 %v88_v4, %v87_v2  ;;  %v58_v13 = vld [vmem:[#allocation5 + $0x98] sm:$0xff]  ;;  %v901_v61 = vshrl.u32 %v168_v47, 7  ;;  %s822_s7 = scalar_lea.vmem %s496_s6, 16  ;;  %s826_s8 = scalar_lea.vmem %s496_s6, 32 }
  0x29   :  { %v647_v8 = vpack.c.bf16 %v40_v6, %v39_v5  ;;  %v71_v9 = vld [vmem:[#allocation5 + $0x100] sm:$0xff]  ;;  %v72_v10 = vld [vmem:[#allocation5 + $0x108] sm:$0xff]  ;;  %646 = vmatprep.subr.bf16.mxu0 %v645_v3  ;;  %v89_v14 = vld [vmem:[#allocation5 + $0x190] sm:$0xff]  ;;  %v649_v16 = vpack.c.bf16 %v58_v13, %v57_v11  ;;  %p823_p2 = scmp.ne.s32.totalorder %s496_s6, %s822_s7  ;;  %p827_p3 = scmp.lt.s32.totalorder %s496_s6, %s496_s6 }
  0x2a   :  { %v679_v12 = vpack.c.bf16 %v72_v10, %v71_v9  ;;  %v90_v15 = vld [vmem:[#allocation5 + $0x198] sm:$0xff]  ;;  %678 = vmatprep.subr.bf16.mxu1 %v677_v7  ;;  %v41_v18 = vld [vmem:[#allocation5 + $0x10] sm:$0xff]  ;;  %v59_v23 = vld [vmem:[#allocation5 + $0xa0] sm:$0xff]  ;;  %v174_v10 = vsub.s32 1, %v901_v61  ;;  %v182_v11 = vsub.s32 3, %v901_v61  ;;  %p828_p4 = scmp.lt.s32.totalorder %s826_s8, %s822_s7 }
  0x2b   :  { %648 = vmatpush3.bf16.msra.mxu0 %v647_v8  ;;  %v681_v17 = vpack.c.bf16 %v90_v15, %v89_v14  ;;  %v42_v19 = vld [vmem:[#allocation5 + $0x18] sm:$0xff]  ;;  %v73_v20 = vld [vmem:[#allocation5 + $0x110] sm:$0xff]  ;;  %v60_v24 = vld [vmem:[#allocation5 + $0xa8] sm:$0xff] }
  0x2c   :  { %680 = vmatpush3.bf16.msra.mxu1 %v679_v12  ;;  %v651_v21 = vpack.c.bf16 %v42_v19, %v41_v18  ;;  %v74_v22 = vld [vmem:[#allocation5 + $0x118] sm:$0xff]  ;;  %650 = vmatprep.subr.bf16.mxu0 %v649_v16  ;;  %v653_v26 = vpack.c.bf16 %v60_v24, %v59_v23  ;;  %v91_v27 = vld [vmem:[#allocation5 + $0x1a0] sm:$0xff]  ;;  %v92_v28 = vld [vmem:[#allocation5 + $0x1a8] sm:$0xff]  ;;  %p829_p5 = por %p828_p4, %p827_p3 }
  0x2d   :  { %682 = vmatprep.subr.bf16.mxu1 %v681_v17  ;;  %v683_v25 = vpack.c.bf16 %v74_v22, %v73_v20  ;;  %v43_v29 = vld [vmem:[#allocation5 + $0x20] sm:$0xff]  ;;  %v685_v30 = vpack.c.bf16 %v92_v28, %v91_v27  ;;  %v44_v31 = vld [vmem:[#allocation5 + $0x28] sm:$0xff]  ;;  %v61_v35 = vld [vmem:[#allocation5 + $0xb0] sm:$0xff] }
  0x2e   :  { %v75_v32 = vld [vmem:[#allocation5 + $0x120] sm:$0xff]  ;;  %v76_v33 = vld [vmem:[#allocation5 + $0x128] sm:$0xff]  ;;  %v655_v34 = vpack.c.bf16 %v44_v31, %v43_v29  ;;  %v62_v36 = vld [vmem:[#allocation5 + $0xb8] sm:$0xff]  ;;  %p830_p6 = pnand %p829_p5, %p823_p2 }
  0x2f   :  { %652 = vmatpush3.bf16.msra.mxu0 %v651_v21  ;;  %v93_v37 = vld [vmem:[#allocation5 + $0x1b0] sm:$0xff]  ;;  %v687_v38 = vpack.c.bf16 %v76_v33, %v75_v32  ;;  %v657_v39 = vpack.c.bf16 %v62_v36, %v61_v35  ;;  %v94_v40 = vld [vmem:[#allocation5 + $0x1b8] sm:$0xff]  ;;  %v63_v46 = vld [vmem:[#allocation5 + $0xc0] sm:$0xff] }
  0x30   :  { %684 = vmatpush3.bf16.msra.mxu1 %v683_v25  ;;  %654 = vmatprep.subr.bf16.mxu0 %v653_v26  ;;  %v45_v41 = vld [vmem:[#allocation5 + $0x30] sm:$0xff]  ;;  %v46_v42 = vld [vmem:[#allocation5 + $0x38] sm:$0xff]  ;;  %v689_v43 = vpack.c.bf16 %v94_v40, %v93_v37  ;;  %v64_v48 = vld [vmem:[#allocation5 + $0xc8] sm:$0xff] }
  0x31   :  { %686 = vmatprep.subr.bf16.mxu1 %v685_v30  ;;  %v77_v44 = vld [vmem:[#allocation5 + $0x130] sm:$0xff]  ;;  %v78_v45 = vld [vmem:[#allocation5 + $0x138] sm:$0xff]  ;;  %v95_v49 = vld [vmem:[#allocation5 + $0x1c0] sm:$0xff]  ;;  %v659_v51 = vpack.c.bf16 %v46_v42, %v45_v41  ;;  %v661_v53 = vpack.c.bf16 %v64_v48, %v63_v46 }
  0x32   :  { %v96_v50 = vld [vmem:[#allocation5 + $0x1c8] sm:$0xff]  ;;  %v691_v52 = vpack.c.bf16 %v78_v45, %v77_v44  ;;  %v47_v54 = vld [vmem:[#allocation5 + $0x40] sm:$0xff]  ;;  %v65_v59 = vld [vmem:[#allocation5 + $0xd0] sm:$0xff] }
  0x33   :  { %656 = vmatpush3.bf16.msra.mxu0 %v655_v34  ;;  %v48_v55 = vld [vmem:[#allocation5 + $0x48] sm:$0xff]  ;;  %v79_v56 = vld [vmem:[#allocation5 + $0x140] sm:$0xff]  ;;  %v693_v57 = vpack.c.bf16 %v96_v50, %v95_v49  ;;  %v66_v60 = vld [vmem:[#allocation5 + $0xd8] sm:$0xff] }
  0x34   :  { %688 = vmatpush3.bf16.msra.mxu1 %v687_v38  ;;  %658 = vmatprep.subr.bf16.mxu0 %v657_v39  ;;  %v80_v58 = vld [vmem:[#allocation5 + $0x148] sm:$0xff]  ;;  %v97_v62 = vld [vmem:[#allocation5 + $0x1d0] sm:$0xff]  ;;  %v98_v63 = vld [vmem:[#allocation5 + $0x1d8] sm:$0xff]  ;;  %v663_v0 = vpack.c.bf16 %v48_v55, %v47_v54  ;;  %v665_v2 = vpack.c.bf16 %v66_v60, %v65_v59  ;;  %v170_v39 = vsub.s32 0, %v901_v61 }
  0x35   :  { %690 = vmatprep.subr.bf16.mxu1 %v689_v43  ;;  %v695_v1 = vpack.c.bf16 %v80_v58, %v79_v56  ;;  %v49_v3 = vld [vmem:[#allocation5 + $0x50] sm:$0xff]  ;;  %v50_v4 = vld [vmem:[#allocation5 + $0x58] sm:$0xff]  ;;  %v697_v6 = vpack.c.bf16 %v98_v63, %v97_v62  ;;  %v67_v8 = vld [vmem:[#allocation5 + $0xe0] sm:$0xff]  ;;  %v178_v43 = vsub.s32 2, %v901_v61 }
  0x36   :  { %v81_v5 = vld [vmem:[#allocation5 + $0x150] sm:$0xff]  ;;  %v82_v7 = vld [vmem:[#allocation5 + $0x158] sm:$0xff]  ;;  %v68_v9 = vld [vmem:[#allocation5 + $0xe8] sm:$0xff]  ;;  %v667_v14 = vpack.c.bf16 %v50_v4, %v49_v3 }
  0x37   :  { %660 = vmatpush3.bf16.msra.mxu0 %v659_v51  ;;  %v99_v12 = vld [vmem:[#allocation5 + $0x1e0] sm:$0xff]  ;;  %v100_v13 = vld [vmem:[#allocation5 + $0x1e8] sm:$0xff]  ;;  %v699_v16 = vpack.c.bf16 %v82_v7, %v81_v5  ;;  %v669_v17 = vpack.c.bf16 %v68_v9, %v67_v8  ;;  %v905_v20 = vld [vmem:[#allocation2] sm:$0xff] }
  0x38   :  { %692 = vmatpush3.bf16.msra.mxu1 %v691_v52  ;;  %662 = vmatprep.subr.bf16.mxu0 %v661_v53  ;;  %v51_v15 = vld [vmem:[#allocation5 + $0x60] sm:$0xff]  ;;  %v52_v18 = vld [vmem:[#allocation5 + $0x68] sm:$0xff]  ;;  %v701_v21 = vpack.c.bf16 %v100_v13, %v99_v12  ;;  %v69_v23 = vld [vmem:[#allocation5 + $0xf0] sm:$0xff]  ;;  %v175_v25 = vrot.slane %v905_v20, %v174_v10  ;;  %v183_v26 = vrot.slane %v905_v20, %v182_v11  ;;  %v190_v53 = vsub.s32 5, %v901_v61 }
  0x39   :  { %694 = vmatprep.subr.bf16.mxu1 %v693_v57  ;;  %v83_v19 = vld [vmem:[#allocation5 + $0x160] sm:$0xff]  ;;  %v84_v22 = vld [vmem:[#allocation5 + $0x168] sm:$0xff]  ;;  %v70_v24 = vld [vmem:[#allocation5 + $0xf8] sm:$0xff]  ;;  %v671_v29 = vpack.c.bf16 %v52_v18, %v51_v15  ;;  %v171_v54 = vrot.slane %v905_v20, %v170_v39  ;;  %v198_v57 = vsub.s32 7, %v901_v61  ;;  %v179_v58 = vrot.slane %v905_v20, %v178_v43 }
  0x3a   :  { %v101_v27 = vld [vmem:[#allocation5 + $0x1f0] sm:$0xff]  ;;  %v102_v28 = vld [vmem:[#allocation5 + $0x1f8] sm:$0xff]  ;;  %272 = vmatprep.mubr.f32.mxu0 %v175_v25  ;;  %v703_v30 = vpack.c.bf16 %v84_v22, %v83_v19  ;;  %v673_v31 = vpack.c.bf16 %v70_v24, %v69_v23  ;;  %342 = vmatprep.mubr.f32.mxu1 %v183_v26  ;;  %v119_v37 = vld [vmem:[#allocation5 + $0x280] sm:$0xff] }
  0x3b   :  { %664 = vmatpush3.bf16.msra.mxu0 %v663_v0  ;;  %v53_v32 = vld [vmem:[#allocation5 + $0x70] sm:$0xff]  ;;  %v54_v33 = vld [vmem:[#allocation5 + $0x78] sm:$0xff]  ;;  %v705_v35 = vpack.c.bf16 %v102_v28, %v101_v27  ;;  %v120_v38 = vld [vmem:[#allocation5 + $0x288] sm:$0xff]  ;;  %v199_v9 = vrot.slane %v905_v20, %v198_v57 }
  0x3c   :  { %696 = vmatpush3.bf16.msra.mxu1 %v695_v1  ;;  %666 = vmatprep.subr.bf16.mxu0 %v665_v2  ;;  %v85_v34 = vld [vmem:[#allocation5 + $0x170] sm:$0xff]  ;;  %v86_v36 = vld [vmem:[#allocation5 + $0x178] sm:$0xff]  ;;  %v151_v40 = vld [vmem:[#allocation5 + $0x380] sm:$0xff]  ;;  %v675_v42 = vpack.c.bf16 %v54_v33, %v53_v32  ;;  %v709_v45 = vpack.c.bf16 %v120_v38, %v119_v37 }
  0x3d   :  { %698 = vmatprep.subr.bf16.mxu1 %v697_v6  ;;  %v152_v41 = vld [vmem:[#allocation5 + $0x388] sm:$0xff]  ;;  %v707_v44 = vpack.c.bf16 %v86_v36, %v85_v34  ;;  %v103_v46 = vld [vmem:[#allocation5 + $0x200] sm:$0xff]  ;;  %v121_v51 = vld [vmem:[#allocation5 + $0x290] sm:$0xff]  ;;  %v191_v6 = vrot.slane %v905_v20, %v190_v53 }
  0x3e   :  { %v104_v47 = vld [vmem:[#allocation5 + $0x208] sm:$0xff]  ;;  %v135_v48 = vld [vmem:[#allocation5 + $0x300] sm:$0xff]  ;;  %v741_v49 = vpack.c.bf16 %v152_v41, %v151_v40  ;;  %v122_v52 = vld [vmem:[#allocation5 + $0x298] sm:$0xff] }
  0x3f   :  { %668 = vmatpush3.bf16.msra.mxu0 %v667_v14  ;;  %v136_v50 = vld [vmem:[#allocation5 + $0x308] sm:$0xff]  ;;  %v153_v55 = vld [vmem:[#allocation5 + $0x390] sm:$0xff]  ;;  %v154_v56 = vld [vmem:[#allocation5 + $0x398] sm:$0xff]  ;;  %v711_v59 = vpack.c.bf16 %v104_v47, %v103_v46  ;;  %v713_v62 = vpack.c.bf16 %v122_v52, %v121_v51 }
  0x40   :  { %700 = vmatpush3.bf16.msra.mxu1 %v699_v16  ;;  %670 = vmatprep.subr.bf16.mxu0 %v669_v17  ;;  %v743_v60 = vpack.c.bf16 %v136_v50, %v135_v48  ;;  %v105_v63 = vld [vmem:[#allocation5 + $0x210] sm:$0xff]  ;;  %v106_v0 = vld [vmem:[#allocation5 + $0x218] sm:$0xff]  ;;  %v745_v2 = vpack.c.bf16 %v154_v56, %v153_v55  ;;  %v123_v4 = vld [vmem:[#allocation5 + $0x2a0] sm:$0xff] }
  0x41   :  { %702 = vmatprep.subr.bf16.mxu1 %v701_v21  ;;  %v137_v1 = vld [vmem:[#allocation5 + $0x310] sm:$0xff]  ;;  %v138_v3 = vld [vmem:[#allocation5 + $0x318] sm:$0xff]  ;;  %v124_v5 = vld [vmem:[#allocation5 + $0x2a8] sm:$0xff]  ;;  %v715_v10 = vpack.c.bf16 %v106_v0, %v105_v63 }
  0x42   :  { %v155_v7 = vld [vmem:[#allocation5 + $0x3a0] sm:$0xff]  ;;  %v156_v8 = vld [vmem:[#allocation5 + $0x3a8] sm:$0xff]  ;;  %v747_v11 = vpack.c.bf16 %v138_v3, %v137_v1  ;;  %v717_v12 = vpack.c.bf16 %v124_v5, %v123_v4  ;;  %v125_v18 = vld [vmem:[#allocation5 + $0x2b0] sm:$0xff] }
  0x43   :  { %672 = vmatpush3.bf16.msra.mxu0 %v671_v29  ;;  %v107_v13 = vld [vmem:[#allocation5 + $0x220] sm:$0xff]  ;;  %v108_v14 = vld [vmem:[#allocation5 + $0x228] sm:$0xff]  ;;  %v749_v16 = vpack.c.bf16 %v156_v8, %v155_v7  ;;  %v126_v19 = vld [vmem:[#allocation5 + $0x2b8] sm:$0xff] }
  0x44   :  { %704 = vmatpush3.bf16.msra.mxu1 %v703_v30  ;;  %674 = vmatprep.subr.bf16.mxu0 %v673_v31  ;;  %v139_v15 = vld [vmem:[#allocation5 + $0x320] sm:$0xff]  ;;  %v140_v17 = vld [vmem:[#allocation5 + $0x328] sm:$0xff]  ;;  %v157_v21 = vld [vmem:[#allocation5 + $0x3b0] sm:$0xff]  ;;  %v719_v23 = vpack.c.bf16 %v108_v14, %v107_v13  ;;  %v721_v25 = vpack.c.bf16 %v126_v19, %v125_v18  ;;  %v194_v18 = vsub.s32 6, %v901_v61 }
  0x45   :  { %706 = vmatprep.subr.bf16.mxu1 %v705_v35  ;;  %v158_v22 = vld [vmem:[#allocation5 + $0x3b8] sm:$0xff]  ;;  %v751_v24 = vpack.c.bf16 %v140_v17, %v139_v15  ;;  %v109_v26 = vld [vmem:[#allocation5 + $0x230] sm:$0xff]  ;;  %v127_v31 = vld [vmem:[#allocation5 + $0x2c0] sm:$0xff] }
  0x46   :  { %v110_v27 = vld [vmem:[#allocation5 + $0x238] sm:$0xff]  ;;  %v141_v28 = vld [vmem:[#allocation5 + $0x330] sm:$0xff]  ;;  %v753_v29 = vpack.c.bf16 %v158_v22, %v157_v21  ;;  %v128_v32 = vld [vmem:[#allocation5 + $0x2c8] sm:$0xff]  ;;  %v195_v22 = vrot.slane %v905_v20, %v194_v18 }
  0x47   :  { %676 = vmatpush3.bf16.msra.mxu0 %v675_v42  ;;  %v142_v30 = vld [vmem:[#allocation5 + $0x338] sm:$0xff]  ;;  %v159_v33 = vld [vmem:[#allocation5 + $0x3c0] sm:$0xff]  ;;  %v160_v34 = vld [vmem:[#allocation5 + $0x3c8] sm:$0xff]  ;;  %v723_v35 = vpack.c.bf16 %v110_v27, %v109_v26  ;;  %v725_v37 = vpack.c.bf16 %v128_v32, %v127_v31 }
  0x48   :  { %708 = vmatpush3.bf16.msra.mxu1 %v707_v44  ;;  %710 = vmatprep.subr.bf16.mxu0 %v709_v45  ;;  %v755_v36 = vpack.c.bf16 %v142_v30, %v141_v28  ;;  %v111_v38 = vld [vmem:[#allocation5 + $0x240] sm:$0xff]  ;;  %v112_v39 = vld [vmem:[#allocation5 + $0x248] sm:$0xff]  ;;  %v757_v41 = vpack.c.bf16 %v160_v34, %v159_v33  ;;  %v129_v43 = vld [vmem:[#allocation5 + $0x2d0] sm:$0xff] }
  0x49   :  { %742 = vmatprep.subr.bf16.mxu1 %v741_v49  ;;  %v143_v40 = vld [vmem:[#allocation5 + $0x340] sm:$0xff]  ;;  %v144_v42 = vld [vmem:[#allocation5 + $0x348] sm:$0xff]  ;;  %v130_v44 = vld [vmem:[#allocation5 + $0x2d8] sm:$0xff]  ;;  %v727_v47 = vpack.c.bf16 %v112_v39, %v111_v38 }
  0x4a   :  { %273 = vmatmul.mubr.f32.vlgmr.msra.gmra.mrb[0].mxu0 %v171_v54  ;;  %v161_v45 = vld [vmem:[#allocation5 + $0x3d0] sm:$0xff]  ;;  %v162_v46 = vld [vmem:[#allocation5 + $0x3d8] sm:$0xff]  ;;  %v759_v48 = vpack.c.bf16 %v144_v42, %v143_v40  ;;  %v729_v49 = vpack.c.bf16 %v130_v44, %v129_v43  ;;  %v131_v55 = vld [vmem:[#allocation5 + $0x2e0] sm:$0xff] }
  0x4b   :  { %343 = vmatmul.mubr.f32.vlgmr.msra.gmra.mrb[0].mxu1 %v179_v58  ;;  %712 = vmatpush3.bf16.msra.mxu0 %v711_v59  ;;  %v113_v50 = vld [vmem:[#allocation5 + $0x250] sm:$0xff]  ;;  %v114_v51 = vld [vmem:[#allocation5 + $0x258] sm:$0xff]  ;;  %v761_v53 = vpack.c.bf16 %v162_v46, %v161_v45  ;;  %v132_v56 = vld [vmem:[#allocation5 + $0x2e8] sm:$0xff] }
  0x4c   :  { %744 = vmatpush3.bf16.msra.mxu1 %v743_v60  ;;  %714 = vmatprep.subr.bf16.mxu0 %v713_v62  ;;  %v145_v52 = vld [vmem:[#allocation5 + $0x350] sm:$0xff]  ;;  %v146_v54 = vld [vmem:[#allocation5 + $0x358] sm:$0xff]  ;;  %v163_v57 = vld [vmem:[#allocation5 + $0x3e0] sm:$0xff]  ;;  %v731_v59 = vpack.c.bf16 %v114_v51, %v113_v50  ;;  %v733_v62 = vpack.c.bf16 %v132_v56, %v131_v55 }
  0x4d   :  { %746 = vmatprep.subr.bf16.mxu1 %v745_v2  ;;  %412 = vmatprep.mubr.f32.mxu0 %v191_v6  ;;  %v164_v58 = vld [vmem:[#allocation5 + $0x3e8] sm:$0xff]  ;;  %v763_v60 = vpack.c.bf16 %v146_v54, %v145_v52  ;;  %v115_v63 = vld [vmem:[#allocation5 + $0x260] sm:$0xff]  ;;  %v133_v4 = vld [vmem:[#allocation5 + $0x2f0] sm:$0xff] }
  0x4e   :  { %482 = vmatprep.mubr.f32.mxu1 %v199_v9  ;;  %v116_v0 = vld [vmem:[#allocation5 + $0x268] sm:$0xff]  ;;  %v147_v1 = vld [vmem:[#allocation5 + $0x360] sm:$0xff]  ;;  %v765_v2 = vpack.c.bf16 %v164_v58, %v163_v57  ;;  %v134_v5 = vld [vmem:[#allocation5 + $0x2f8] sm:$0xff] }
  0x4f   :  { %716 = vmatpush3.bf16.msra.mxu0 %v715_v10  ;;  %v148_v3 = vld [vmem:[#allocation5 + $0x368] sm:$0xff]  ;;  %v165_v6 = vld [vmem:[#allocation5 + $0x3f0] sm:$0xff]  ;;  %v166_v7 = vld [vmem:[#allocation5 + $0x3f8] sm:$0xff]  ;;  %v735_v8 = vpack.c.bf16 %v116_v0, %v115_v63  ;;  %v737_v10 = vpack.c.bf16 %v134_v5, %v133_v4 }
  0x50   :  { %748 = vmatpush3.bf16.msra.mxu1 %v747_v11  ;;  %718 = vmatprep.subr.bf16.mxu0 %v717_v12  ;;  %v767_v9 = vpack.c.bf16 %v148_v3, %v147_v1  ;;  %v117_v11 = vld [vmem:[#allocation5 + $0x270] sm:$0xff]  ;;  %v118_v12 = vld [vmem:[#allocation5 + $0x278] sm:$0xff]  ;;  %v769_v13 = vpack.c.bf16 %v166_v7, %v165_v6 }
  0x51   :  { %750 = vmatprep.subr.bf16.mxu1 %v749_v16  ;;  %v149_v14 = vld [vmem:[#allocation5 + $0x370] sm:$0xff]  ;;  %v150_v15 = vld [vmem:[#allocation5 + $0x378] sm:$0xff]  ;;  %v186_v16 = vsub.s32 4, %v901_v61  ;;  %v739_v17 = vpack.c.bf16 %v118_v12, %v117_v11 }
  0x52   :  { %v771_v19 = vpack.c.bf16 %v150_v15, %v149_v14 }
  0x53   :  { %720 = vmatpush3.bf16.msra.mxu0 %v719_v23  ;;  %v187_v21 = vrot.slane %v905_v20, %v186_v16 }
  0x54   :  { %752 = vmatpush3.bf16.msra.mxu1 %v751_v24  ;;  %722 = vmatprep.subr.bf16.mxu0 %v721_v25 }
  0x55   :  { %754 = vmatprep.subr.bf16.mxu1 %v753_v29 }
  0x57   :  { %724 = vmatpush3.bf16.msra.mxu0 %v723_v35 }
  0x58   :  { %756 = vmatpush3.bf16.msra.mxu1 %v755_v36  ;;  %726 = vmatprep.subr.bf16.mxu0 %v725_v37 }
  0x59   :  { %758 = vmatprep.subr.bf16.mxu1 %v757_v41 }
  0x5b   :  { %728 = vmatpush3.bf16.msra.mxu0 %v727_v47 }
  0x5c   :  { %760 = vmatpush3.bf16.msra.mxu1 %v759_v48  ;;  %730 = vmatprep.subr.bf16.mxu0 %v729_v49 }
  0x5d   :  { %762 = vmatprep.subr.bf16.mxu1 %v761_v53 }
  0x5f   :  { %732 = vmatpush3.bf16.msra.mxu0 %v731_v59 }
  0x60   :  { %764 = vmatpush3.bf16.msra.mxu1 %v763_v60  ;;  %734 = vmatprep.subr.bf16.mxu0 %v733_v62 }
  0x61   :  { %766 = vmatprep.subr.bf16.mxu1 %v765_v2 }
  0x63   :  { %736 = vmatpush3.bf16.msra.mxu0 %v735_v8 }
  0x64   :  { %768 = vmatpush3.bf16.msra.mxu1 %v767_v9  ;;  %738 = vmatprep.subr.bf16.mxu0 %v737_v10 }
  0x65   :  { %770 = vmatprep.subr.bf16.mxu1 %v769_v13 }
  0x67   :  { %740 = vmatpush3.bf16.msra.mxu0 %v739_v17 }
  0x68   :  { %772 = vmatpush3.bf16.msra.mxu1 %v771_v19 }
  0x6a   :  { %413 = vmatmul.mubr.f32.vlgmr.msra.gmra.mrb[2].mxu0 %v187_v21 }
  0x6b   :  { %483 = vmatmul.mubr.f32.vlgmr.msra.gmra.mrb[2].mxu1 %v195_v22 }
 0x11d   :  { %v537_v23 = vpop.f32.mrb[0].mxu0 }
 0x11e   :  { %v572_v24 = vpop.f32.mrb[0].mxu1  ;;  %v538_v25 = vpop.f32.mrb[1].mxu0 }
 0x11f   :  { %v539_v26 = vadd.f32 %v538_v25, %v537_v23  ;;  %v573_v27 = vpop.f32.mrb[1].mxu1 }
 0x120   :  { %v574_v28 = vadd.f32 %v573_v27, %v572_v24 }
 0x122   :  { %v345_v29 = vadd.f32 %v574_v28, %v539_v26 }
 0x13d   :  { %v607_v61 = vpop.f32.mrb[2].mxu0 }
 0x13e   :  { %v608_v30 = vpop.f32.mrb[3].mxu0  ;;  %v642_v31 = vpop.f32.mrb[2].mxu1 }
 0x13f   :  { %v609_v32 = vadd.f32 %v608_v30, %v607_v61  ;;  %v643_v33 = vpop.f32.mrb[3].mxu1 }
 0x140   :  { %v644_v34 = vadd.f32 %v643_v33, %v642_v31 }
 0x141   :  { %v415_v35 = vadd.f32 %v609_v32, %v345_v29 }
 0x143   :  { %v485_v20 = vadd.f32 %v644_v34, %v415_v35 }
 0x145   :  { %488 = vst [vmem:[#allocation7] sm:$0x1] %v485_v20 }
 0x146   :  { %833 = shalt.err (!%p830_p6)
}
 0x147   :  { %s834_s11 = scalar_lea.hbm %s935_s2, 16 }
 0x148   :  { %p835_p7 = scmp.ne.s32.totalorder %s935_s2, %s834_s11  ;;  %p838_p8 = scmp.lt.u32.totalorder %s834_s11, %s935_s2 }
 0x14a   :  { %p840_p9 = pnand %p838_p8, %p835_p7 }
 0x14c   :  { %843 = shalt.err (!%p840_p9)
}
 0x14d   :  { %498 = dma.vmem_to_hbm [thread:$0]  %s496_s6, 16, %s935_s2, [#allocation4]  }
 0x14e   :  { %848 = dma.done.wait [#allocation4], 16  }
 0x14f   :  { %849 = vsyncadd [#allocation4], 4294967280 }
 0x150   :  { %502 = vsyncpa [#allocation3], 1 }
 0x151   :  { %503 = vsyncpa [#allocation6], 1 }
 0x152   :  { %504 = vsyncpa [#allocation4], 1 }

</bundles_post_ra>
